<compile_context>
chip_gen: v7x
topology: tpu7x:2x2x1
jax: 0.10.0
libtpu: 0.0.40
codegen_flags: <defaults>
</compile_context>

<pallas_src>
import functools

import jax
import jax.numpy as jnp
from jax.experimental import pallas as pl
from jax.experimental.pallas import tpu as pltpu


def _round_up(x, m):
    return ((x + m - 1) // m) * m


def _cdiv(a, b):
    return -(-a // b)


@functools.lru_cache(maxsize=1)
def _tpu_generation_info():
    """(mxu_align, vmem_capacity_bytes, tensorcores_per_chip) for this backend."""
    kind = ""
    try:
        kind = jax.devices()[0].device_kind.lower()
    except Exception:
        pass
    vmem_cap = None
    try:
        vmem_cap = int(pltpu.get_tpu_info().vmem_capacity_bytes)
    except Exception:
        vmem_cap = None
    if "v5" in kind:
        return 128, vmem_cap or (128 << 20), 1      # 128x128 MXU, 128 MiB VMEM, 1 TC
    if "v6" in kind:
        return 256, vmem_cap or (128 << 20), 1      # 256x256 MXU, 128 MiB VMEM, 1 TC
    if "v7" in kind:
        return 256, vmem_cap or (64 << 20), 2       # 256x256 MXU, 64 MiB/TC, 2 TCs
    # Unknown generation: conservative (v7x-sized) VMEM; 256 alignment is safe anywhere.
    return 256, vmem_cap or (64 << 20), 1


def _categorical_head_kernel(x_ref, w_ref, b_ref, out_ref, acc_ref):
    """One (batch-tile i, K-tile k) grid step.

    x_ref:   (TB, TK)      activation slab (compute dtype)
    w_ref:   (TK, N_pad)   weight slab, pre-transposed [in, out] layout
    b_ref:   (1, N_pad)    f32 bias (padded lanes hold -1e30)
    out_ref: (TB, N_pad)   log-probs (out dtype)
    acc_ref: (TB, N_pad)   f32 accumulator, resident across the K axis
    """
    k = pl.program_id(1)

    @pl.when(k == 0)
    def _():
        # Bias folded into the accumulator init: saves an epilogue RMW pass.
        acc_ref[...] = jnp.broadcast_to(b_ref[...], acc_ref.shape)

    # Standard (TB,TK)x(TK,N) MXU contraction, f32 accumulation.
    acc_ref[...] += jnp.dot(x_ref[...], w_ref[...],
                            preferred_element_type=jnp.float32)

    @pl.when(k == pl.num_programs(1) - 1)
    def _():
        y = acc_ref[...]                            # bias already included
        m = jnp.max(y, axis=-1, keepdims=True)      # padded lanes = -1e30, never max
        s = y - m
        denom = jnp.sum(jnp.exp(s), axis=-1, keepdims=True)
        out_ref[...] = (s - jnp.log(denom)).astype(out_ref.dtype)


def prepare_categorical_head_params(weight, bias, *, compute_dtype=jnp.float32,
                                    weight_slab_budget_bytes=None):
    """ONE-TIME (init-time) param prep.

    weight: [out, in] (PyTorch nn.Linear convention), bias: [out].
    Returns (w_padded [K_pad, N_pad]  -- pre-transposed, lane-dense in N --,
             b_padded [1, N_pad], meta).
    """
    out_size, in_size = weight.shape
    mxu_align, vmem_cap, _ = _tpu_generation_info()

    # Lane-dense N; bump to the 256-wide MXU only when the head is big enough.
    n_align = mxu_align if out_size > 128 else 128
    n_pad = _round_up(out_size, n_align)

    itemsize = jnp.dtype(compute_dtype).itemsize
    if weight_slab_budget_bytes is None:
        # Generation-aware: ~45% of physical VMEM for the double-buffered weight
        # slab (v5e/v6e ~57 MiB, v7x ~28 MiB); the rest is x / out / acc / scratch.
        weight_slab_budget_bytes = max(16 << 20, int(vmem_cap * 0.45))

    # K padding: only to the MXU alignment, NOT to a whole TK multiple.
    k_align = mxu_align if in_size > 128 else 128
    k_pad0 = _round_up(in_size, k_align)
    tk_cap = max(k_align,
                 (weight_slab_budget_bytes // (2 * n_pad * itemsize))
                 // k_align * k_align)
    n_k = _cdiv(k_pad0, tk_cap)
    tk = _round_up(_cdiv(k_pad0, n_k), k_align)
    k_pad = tk * n_k                                # waste <= k_align per K tile

    # Pre-transpose once: [out, in] -> [K_pad, N_pad]; padded cols/rows are zero.
    w_p = jnp.zeros((k_pad, n_pad), compute_dtype)
    w_p = w_p.at[:in_size, :out_size].set(weight.T.astype(compute_dtype))
    # Padded output lanes get a large negative *finite* bias so exp() -> 0
    # without inf - inf = NaN in the max subtraction.
    b_p = jnp.full((1, n_pad), -1e30, jnp.float32)
    b_p = b_p.at[0, :out_size].set(bias.astype(jnp.float32))

    meta = dict(out_size=out_size, in_size=in_size, n_pad=n_pad, k_pad=k_pad,
                tk=tk, compute_dtype=compute_dtype)
    return w_p, b_p, meta


def categorical_head(x, w_padded, b_padded, meta, *, tb=256,
                     out_dtype=jnp.float32, small_problem_xla_fallback=False):
    """x: [B, in_size] -> log-probs [B, out_size] (the Categorical's logits)."""
    B, in_size = x.shape
    assert in_size == meta["in_size"]
    n_pad, k_pad, tk = meta["n_pad"], meta["k_pad"], meta["tk"]
    out_size, cdt = meta["out_size"], meta["compute_dtype"]
    mxu_align, vmem_cap, num_tc = _tpu_generation_info()

    # Tiny deployed shapes (e.g. B=8, in=32, out=16) are pure launch/DMA-latency
    # bound; optionally bypass the kernel entirely.
    if small_problem_xla_fallback and (B * in_size * out_size) < (1 << 16):
        w = w_padded[:in_size, :out_size].astype(jnp.float32)
        b = b_padded[0, :out_size]
        y = x.astype(jnp.float32) @ w + b
        return jax.nn.log_softmax(y, axis=-1).astype(out_dtype)

    # ---- batch tiling -------------------------------------------------------
    b_rows = _round_up(B, 8)
    tb = max(8, min(_round_up(tb, 8), b_rows))

    itemsize = jnp.dtype(cdt).itemsize
    out_itemsize = jnp.dtype(out_dtype).itemsize

    def vmem_bytes(tb_):
        return (2 * tb_ * tk * itemsize           # x slab (double-buffered)
                + 2 * tk * n_pad * itemsize       # weight slab (double-buffered)
                + 2 * tb_ * n_pad * out_itemsize  # output tile (double-buffered)
                + tb_ * n_pad * 4                 # f32 accumulator scratch
                + 2 * n_pad * 4)                  # bias

    # Exact accounting + 15% headroom, capped below this generation's physical
    # VMEM (v7x ~51 MiB, v5e/v6e ~102 MiB).  Shrink tb until it fits.
    budget = int(vmem_cap * 0.80)
    while tb > 8 and vmem_bytes(tb) * 1.15 > budget:
        tb = max(8, _round_up(tb // 2, 8))

    # v7x megacore: make sure both TensorCores get at least one batch tile
    # (accepting the 2x weight-DMA duplication across cores).
    if num_tc > 1 and (b_rows // tb) < num_tc and tb >= 16:
        tb = max(8, _round_up(_cdiv(b_rows, num_tc), 8))

    b_rows = _round_up(b_rows, tb)

    # ---- activation padding (no-op for aligned shapes) ----------------------
    x_p = x if x.dtype == cdt else x.astype(cdt)
    pad_b, pad_k = b_rows - B, k_pad - in_size
    if pad_b or pad_k:
        x_p = jnp.pad(x_p, ((0, pad_b), (0, pad_k)))

    grid = (b_rows // tb, k_pad // tk)
    vmem_limit = int(min(max(vmem_bytes(tb) * 1.15, 16 << 20), budget))

    out_padded = pl.pallas_call(
        _categorical_head_kernel,
        out_shape=jax.ShapeDtypeStruct((b_rows, n_pad), out_dtype),
        grid_spec=pltpu.PrefetchScalarGridSpec(
            num_scalar_prefetch=0,
            grid=grid,
            in_specs=[
                pl.BlockSpec((tb, tk), lambda i, k: (i, k)),     # x: batch + K tiled
                pl.BlockSpec((tk, n_pad), lambda i, k: (k, 0)),  # weight [K,N]: K tiled
                pl.BlockSpec((1, n_pad), lambda i, k: (0, 0)),   # bias: resident
            ],
            out_specs=pl.BlockSpec((tb, n_pad), lambda i, k: (i, 0)),
            scratch_shapes=[pltpu.VMEM((tb, n_pad), jnp.float32)],
        ),
        compiler_params=pltpu.CompilerParams(
            dimension_semantics=("parallel", "arbitrary"),
            vmem_limit_bytes=vmem_limit),
    )(x_p, w_padded, b_padded)

    return out_padded[:B, :out_size]


if __name__ == "__main__":
    key = jax.random.PRNGKey(0)
    B, input_size, out_size = 8, 32, 16

    kx, kw, kb = jax.random.split(key, 3)
    x = jax.random.normal(kx, (B, input_size), dtype=jnp.float32)
    # Deterministic synthetic parameters (PyTorch nn.Linear layout [out, in]).
    weight = jax.random.normal(kw, (out_size, input_size), dtype=jnp.float32) * 0.1
    bias = jax.random.normal(kb, (out_size,), dtype=jnp.float32) * 0.01

    # Pure-JAX reference: Linear -> log_softmax (the distribution's logits).
    ref = jax.nn.log_softmax(x @ weight.T + bias, axis=-1)

    # ---- f32 compute path (tight numerics) ----
    w32, b32, m32 = prepare_categorical_head_params(weight, bias,
                                                    compute_dtype=jnp.float32)
    lp32 = jax.block_until_ready(categorical_head(x, w32, b32, m32))
    assert lp32.shape == (B, out_size)
    assert jnp.allclose(lp32, ref, atol=1e-5), "f32 mismatch vs reference"
    assert jnp.allclose(jnp.sum(jnp.exp(lp32), axis=-1), 1.0, atol=1e-5)

    # ---- bf16 compute + bf16 output path (halves weight/x/out HBM bytes) ----
    wbf, bbf, mbf = prepare_categorical_head_params(weight, bias,
                                                    compute_dtype=jnp.bfloat16)
    lpbf = jax.block_until_ready(
        categorical_head(x, wbf, bbf, mbf, out_dtype=jnp.bfloat16))
    assert lpbf.shape == (B, out_size)
    lpbf32 = lpbf.astype(jnp.float32)
    assert jnp.allclose(lpbf32, ref, atol=5e-2), "bf16 mismatch vs reference"
    assert jnp.allclose(jnp.sum(jnp.exp(lpbf32), axis=-1), 1.0, atol=2e-2)

    # ---- tiny-shape XLA fallback path (review item) ----
    lp_fb = jax.block_until_ready(
        categorical_head(x, w32, b32, m32, small_problem_xla_fallback=True))
    assert jnp.allclose(lp_fb, ref, atol=1e-5), "fallback mismatch vs reference"

    print("KERNEL_OK")
</pallas_src>

<mosaic_0001>
module attributes {stable_mosaic.version = 11 : i64} {
  func.func @_categorical_head_kernel(%arg0: i32, %arg1: i32, %arg2: memref<8x128xf32, #tpu.memory_space<vmem>>, %arg3: memref<128x128xf32, #tpu.memory_space<vmem>>, %arg4: memref<1x128xf32, #tpu.memory_space<vmem>>, %arg5: memref<8x128xf32, #tpu.memory_space<vmem>>, %arg6: memref<8x128xf32, #tpu.memory_space<vmem>>) attributes {dimension_semantics = [#tpu.dimension_semantics<parallel>, #tpu.dimension_semantics<arbitrary>], iteration_bounds = array<i64: 1, 1>, scalar_prefetch = 0 : i64, scratch_operands = 1 : i64, tpu.core_type = #tpu.core_type<tc>, window_params = [{transform_indices = @transform_0, window_bounds = array<i64: 8, 128>}, {transform_indices = @transform_1, window_bounds = array<i64: 128, 128>}, {pipeline_mode = #tpu.pipeline_mode<synchronous>, transform_indices = @transform_2, window_bounds = array<i64: 1, 128>}, {transform_indices = @transform_3, window_bounds = array<i64: 8, 128>}]} {
    %c0_i32 = arith.constant 0 : i32
    %0 = arith.cmpi eq, %arg1, %c0_i32 : i32
    %1 = arith.extui %0 : i1 to i32
    %c0_i32_0 = arith.constant 0 : i32
    %2 = arith.cmpi ne, %1, %c0_i32_0 : i32
    scf.if %2 {
      %c0_10 = arith.constant 0 : index
      %c0_11 = arith.constant 0 : index
      %12 = vector.load %arg4[%c0_10, %c0_11] : memref<1x128xf32, #tpu.memory_space<vmem>>, vector<1x128xf32>
      %13 = vector.shape_cast %12 : vector<1x128xf32> to vector<1x128xf32>
      %14 = vector.broadcast %13 : vector<1x128xf32> to vector<8x128xf32>
      %c0_12 = arith.constant 0 : index
      %c0_13 = arith.constant 0 : index
      %15 = vector.load %arg6[%c0_12, %c0_13] : memref<8x128xf32, #tpu.memory_space<vmem>>, vector<8x128xf32>
      tpu.vector_store %arg6[%c0_12, %c0_13], %14 {strides = array<i32>} : memref<8x128xf32, #tpu.memory_space<vmem>>, vector<8x128xf32>,
    } else {
    }
    %c0 = arith.constant 0 : index
    %c0_1 = arith.constant 0 : index
    %3 = vector.load %arg6[%c0, %c0_1] : memref<8x128xf32, #tpu.memory_space<vmem>>, vector<8x128xf32>
    %c0_2 = arith.constant 0 : index
    %c0_3 = arith.constant 0 : index
    %4 = vector.load %arg2[%c0_2, %c0_3] : memref<8x128xf32, #tpu.memory_space<vmem>>, vector<8x128xf32>
    %c0_4 = arith.constant 0 : index
    %c0_5 = arith.constant 0 : index
    %5 = vector.load %arg3[%c0_4, %c0_5] : memref<128x128xf32, #tpu.memory_space<vmem>>, vector<128x128xf32>
    %cst = arith.constant dense<0.000000e+00> : vector<8x128xf32>
    %6 = tpu.matmul %4, %5, %cst {dimension_numbers = #tpu.dot_dimension_numbers<[1], [0], [0], [1], [0, 0, 1, 1], [], []>} : vector<8x128xf32>, vector<128x128xf32>, vector<8x128xf32> -> vector<8x128xf32>
    %7 = arith.addf %3, %6 : vector<8x128xf32>
    %c0_6 = arith.constant 0 : index
    %c0_7 = arith.constant 0 : index
    %8 = vector.load %arg6[%c0_6, %c0_7] : memref<8x128xf32, #tpu.memory_space<vmem>>, vector<8x128xf32>
    tpu.vector_store %arg6[%c0_6, %c0_7], %7 {strides = array<i32>} : memref<8x128xf32, #tpu.memory_space<vmem>>, vector<8x128xf32>,
    %c0_i32_8 = arith.constant 0 : i32
    %9 = arith.cmpi eq, %arg1, %c0_i32_8 : i32
    %10 = arith.extui %9 : i1 to i32
    %c0_i32_9 = arith.constant 0 : i32
    %11 = arith.cmpi ne, %10, %c0_i32_9 : i32
    scf.if %11 {
      %c0_10 = arith.constant 0 : index
      %c0_11 = arith.constant 0 : index
      %12 = vector.load %arg6[%c0_10, %c0_11] : memref<8x128xf32, #tpu.memory_space<vmem>>, vector<8x128xf32>
      %cst_12 = arith.constant dense<0xFF800000> : vector<8xf32>
      %13 = vector.multi_reduction <maximumf>, %12, %cst_12 [1] : vector<8x128xf32> to vector<8xf32>
      %14 = vector.shape_cast %13 : vector<8xf32> to vector<8x1xf32>
      %15 = vector.broadcast %14 : vector<8x1xf32> to vector<8x128xf32>
      %16 = arith.subf %12, %15 : vector<8x128xf32>
      %17 = math.exp %16 : vector<8x128xf32>
      %cst_13 = arith.constant dense<0.000000e+00> : vector<8xf32>
      %18 = vector.multi_reduction <add>, %17, %cst_13 [1] : vector<8x128xf32> to vector<8xf32>
      %19 = vector.shape_cast %18 : vector<8xf32> to vector<8x1xf32>
      %20 = math.log %19 : vector<8x1xf32>
      %21 = vector.broadcast %20 : vector<8x1xf32> to vector<8x128xf32>
      %22 = arith.subf %16, %21 : vector<8x128xf32>
      %c0_14 = arith.constant 0 : index
      %c0_15 = arith.constant 0 : index
      %23 = vector.load %arg5[%c0_14, %c0_15] : memref<8x128xf32, #tpu.memory_space<vmem>>, vector<8x128xf32>
      tpu.vector_store %arg5[%c0_14, %c0_15], %22 {strides = array<i32>} : memref<8x128xf32, #tpu.memory_space<vmem>>, vector<8x128xf32>,
    } else {
    }
    return
  }
  func.func @transform_0(%arg0: i32, %arg1: i32) -> (i32, i32) {
    %c0_i32 = arith.constant 0 : i32
    return %arg0, %arg1 : i32, i32
  }
  func.func @transform_1(%arg0: i32, %arg1: i32) -> (i32, i32) {
    %c0_i32 = arith.constant 0 : i32
    %c0_i32_0 = arith.constant 0 : i32
    return %arg1, %c0_i32 : i32, i32
  }
  func.func @transform_2(%arg0: i32, %arg1: i32) -> (i32, i32) {
    %c0_i32 = arith.constant 0 : i32
    %c0_i32_0 = arith.constant 0 : i32
    %c0_i32_1 = arith.constant 0 : i32
    return %c0_i32, %c0_i32_0 : i32, i32
  }
  func.func @transform_3(%arg0: i32, %arg1: i32) -> (i32, i32) {
    %c0_i32 = arith.constant 0 : i32
    %c0_i32_0 = arith.constant 0 : i32
    return %arg0, %c0_i32 : i32, i32
  }
}

</mosaic_0001>

<bundles_post_ra>
// kernel: tpu_custom_call.1
= control target key start
LH: loop header
LB: loop body
LE: loop exit
PB: predicated region body
PF: predicated region fallthrough
CT: control target
= control target key end

     0   :  { %8 = vsyncpa [#allocation4], 0  ;;  %s409_s0 = inlined_call_operand.hbm [shape: f32[8,128], index: 0, kind: input, shape index: {}]   ;;  %s410_s1 = inlined_call_operand.hbm [shape: f32[128,128], index: 1, kind: input, shape index: {}]   ;;  %s411_s2 = inlined_call_operand.vmem [shape: f32[1,128], index: 2, kind: input, shape index: {}]   ;;  %s412_s3 = inlined_call_operand.hbm [shape: f32[8,128], index: 3, kind: output, shape index: {}]  }
   0x1   :  { %9 = vsyncpa [#allocation7], 0 }
   0x2   :  { %10 = vsyncpa [#allocation5], 0  ;;  %s335_s12 = smov [#allocation3]   ;;  %s336_s14 = smov [#allocation6]  }
   0x3   :  { %s17_s13 = sshll.u32 %s335_s12, 4  ;;  %s26_s15 = sshll.u32 %s336_s14, 4  ;;  %s18_s13 = int_to_ptr.vmem [resolvable:$true] %s17_s13  ;;  %s363_s15 = int_to_ptr.vmem [resolvable:$true] %s26_s15 }
   0x4   :  { %s263_s18 = scalar_lea.hbm %s409_s0, 128 }
   0x5   :  { %p264_p0 = scmp.ne.s32.totalorder %s409_s0, %s263_s18  ;;  %p267_p1 = scmp.lt.u32.totalorder %s263_s18, %s409_s0 }
   0x7   :  { %p269_p2 = pnand %p267_p1, %p264_p0 }
   0x9   :  { %272 = shalt.err (!%p269_p2)
}
   0xa   :  { %s273_s23 = scalar_lea.vmem %s18_s13, 128  ;;  %p278_p4 = scmp.lt.s32.totalorder %s18_s13, %s18_s13 }
   0xb   :  { %p274_p3 = scmp.ne.s32.totalorder %s18_s13, %s273_s23  ;;  %p279_p5 = scmp.lt.s32.totalorder %s273_s23, %s273_s23 }
   0xd   :  { %p280_p6 = por %p279_p5, %p278_p4 }
   0xf   :  { %p281_p7 = pnand %p280_p6, %p274_p3 }
  0x11   :  { %284 = shalt.err (!%p281_p7)
}
  0x12   :  { %20 = dma.hbm_to_vmem [thread:$0]  %s409_s0, 128, %s18_s13, [#allocation4]  }
  0x13   :  { %s285_s28 = scalar_lea.hbm %s410_s1, 2048 }
  0x14   :  { %p286_p8 = scmp.ne.s32.totalorder %s410_s1, %s285_s28  ;;  %p289_p9 = scmp.lt.u32.totalorder %s285_s28, %s410_s1 }
  0x16   :  { %p291_p10 = pnand %p289_p9, %p286_p8 }
  0x18   :  { %294 = shalt.err (!%p291_p10)
}
  0x19   :  { %s295_s6 = scalar_lea.vmem %s363_s15, 2048  ;;  %p300_p12 = scmp.lt.s32.totalorder %s363_s15, %s363_s15 }
  0x1a   :  { %p296_p11 = scmp.ne.s32.totalorder %s363_s15, %s295_s6  ;;  %p301_p13 = scmp.lt.s32.totalorder %s295_s6, %s295_s6 }
  0x1c   :  { %p302_p0 = por %p301_p13, %p300_p12 }
  0x1e   :  { %p303_p1 = pnand %p302_p0, %p296_p11 }
  0x20   :  { %306 = shalt.err (!%p303_p1)
}
  0x21   :  { %s337_s0 = smov 128   ;;  %s338_s7 = smov 8  }
  0x22   :  { %32 = dma.hbm_to_vmem [thread:$0]  %s410_s1, 2048, %s363_s15, [#allocation7], %s337_s0, %s337_s0, %s338_s7  }
  0x23   :  { %329 = dma.done.wait [#allocation4], 128  }
  0x24   :  { %330 = vsyncadd [#allocation4], 4294967168 }
  0x25   :  { %331 = dma.done.wait [#allocation7], 2048  }
  0x26   :  { %332 = vsyncadd [#allocation7], 4294965248  ;;  %v339_v0 = vmov 0.0|0.0   ;;  %vm340_vm0 = vmmov 0   ;;  %v341_v1 = vmov 0.0   ;;  %v55_v2 = vld [vmem:[#allocation6] sm:$0xff] }
  0x27   :  { %227 = vmatprep.subr.bf16.mxu0 %v339_v0  ;;  %224 = vmatprep.mubr.msk.f32.mxu0 %vm340_vm0, %v341_v1  ;;  %v56_v3 = vld [vmem:[#allocation6 + $0x8] sm:$0xff]  ;;  %v57_v4 = vld [vmem:[#allocation6 + $0x10] sm:$0xff]  ;;  %v58_v6 = vld [vmem:[#allocation6 + $0x18] sm:$0xff]  ;;  %s342_s11 = smov [#allocation8]  }
  0x28   :  { %v228_v5 = vpack.c.bf16 %v56_v3, %v55_v2  ;;  %v231_v7 = vpack.c.bf16 %v58_v6, %v57_v4  ;;  %v59_v8 = vld [vmem:[#allocation6 + $0x20] sm:$0xff]  ;;  %v60_v9 = vld [vmem:[#allocation6 + $0x28] sm:$0xff]  ;;  %v61_v11 = vld [vmem:[#allocation6 + $0x30] sm:$0xff]  ;;  %s164_s12 = sshll.u32 %s342_s11, 4  ;;  %s165_s12 = int_to_ptr.vmem [resolvable:$true] %s164_s12 }
  0x29   :  { %v234_v10 = vpack.c.bf16 %v60_v9, %v59_v8  ;;  %v62_v12 = vld [vmem:[#allocation6 + $0x38] sm:$0xff]  ;;  %v63_v14 = vld [vmem:[#allocation6 + $0x40] sm:$0xff]  ;;  %v64_v15 = vld [vmem:[#allocation6 + $0x48] sm:$0xff]  ;;  %p312_p3 = scmp.lt.s32.totalorder %s165_s12, %s165_s12 }
  0x2a   :  { %229 = vmatpush3.bf16.msra.mxu0 %v228_v5  ;;  %v237_v13 = vpack.c.bf16 %v62_v12, %v61_v11  ;;  %v240_v16 = vpack.c.bf16 %v64_v15, %v63_v14  ;;  %v65_v17 = vld [vmem:[#allocation6 + $0x50] sm:$0xff]  ;;  %v66_v18 = vld [vmem:[#allocation6 + $0x58] sm:$0xff]  ;;  %v67_v20 = vld [vmem:[#allocation6 + $0x60] sm:$0xff] }
  0x2b   :  { %230 = vmatprep.subr.bf16.mxu0 %v339_v0  ;;  %v243_v19 = vpack.c.bf16 %v66_v18, %v65_v17  ;;  %v68_v21 = vld [vmem:[#allocation6 + $0x68] sm:$0xff]  ;;  %v69_v23 = vld [vmem:[#allocation6 + $0x70] sm:$0xff]  ;;  %v70_v24 = vld [vmem:[#allocation6 + $0x78] sm:$0xff] }
  0x2c   :  { %v246_v22 = vpack.c.bf16 %v68_v21, %v67_v20  ;;  %v249_v25 = vpack.c.bf16 %v70_v24, %v69_v23  ;;  %v54_v26 = vld [vmem:[#allocation3] sm:$0xff] }
  0x2d   :  { %v174_v27 = vld [vmem:[%s411_s2] ss:$0 sm:$0xff]  ;;  %s307_s2 = scalar_lea.vmem %s165_s12, 128 }
  0x2e   :  { %232 = vmatpush3.bf16.msra.mxu0 %v231_v7  ;;  %p308_p2 = scmp.ne.s32.totalorder %s165_s12, %s307_s2  ;;  %p313_p4 = scmp.lt.s32.totalorder %s307_s2, %s307_s2 }
  0x2f   :  { %233 = vmatprep.subr.bf16.mxu0 %v339_v0 }
  0x30   :  { %p314_p5 = por %p313_p4, %p312_p3 }
  0x32   :  { %235 = vmatpush3.bf16.msra.mxu0 %v234_v10  ;;  %p315_p6 = pnand %p314_p5, %p308_p2 }
  0x33   :  { %236 = vmatprep.subr.bf16.mxu0 %v339_v0 }
  0x36   :  { %238 = vmatpush3.bf16.msra.mxu0 %v237_v13 }
  0x37   :  { %239 = vmatprep.subr.bf16.mxu0 %v339_v0 }
  0x3a   :  { %241 = vmatpush3.bf16.msra.mxu0 %v240_v16 }
  0x3b   :  { %242 = vmatprep.subr.bf16.mxu0 %v339_v0 }
  0x3e   :  { %244 = vmatpush3.bf16.msra.mxu0 %v243_v19 }
  0x3f   :  { %245 = vmatprep.subr.bf16.mxu0 %v339_v0 }
  0x42   :  { %247 = vmatpush3.bf16.msra.mxu0 %v246_v22 }
  0x43   :  { %248 = vmatprep.subr.bf16.mxu0 %v339_v0 }
  0x46   :  { %250 = vmatpush3.bf16.msra.mxu0 %v249_v25 }
  0x49   :  { %225 = vmatmul.mubr.f32.vlgmr.msra.gmra.mrb[0].mxu0 %v54_v26 }
 0x11c   :  { %v137_v28 = vpop.f32.mrb[0].mxu0 }
 0x11d   :  { %v141_v29 = vadd.f32 %v174_v27, %v137_v28  ;;  %v226_v30 = vpop.f32.mrb[1].mxu0 }
 0x11f   :  { %147 = vmax.xlane.f32.xlu0 %v141_v29 }
 0x1ac   :  { %v148_v31 = vpop.xlane.xlu0 %147 }
 0x1ad   :  { %v149_v32 = vsub.f32 %v141_v29, %v148_v31 }
 0x1af   :  { %v150_v33 = vmul.f32 1.442695, %v149_v32 }
 0x1b1   :  { %259 = vpow2.f32 %v150_v33 }
 0x1bb   :  { %v260_v34 = vpop.eup %259 }
 0x1bc   :  { %152 = vadd.xlane.f32.xlu0 %v260_v34 }
 0x249   :  { %v153_v35 = vpop.xlane.xlu0 %152 }
 0x24a   :  { %261 = vlog2.f32 %v153_v35 }
 0x254   :  { %v262_v36 = vpop.eup %261 }
 0x255   :  { %v155_v37 = vmul.f32 0.6931472, %v262_v36 }
 0x257   :  { %v156_v38 = vsub.f32 %v149_v32, %v155_v37 }
 0x259   :  { %157 = vst [vmem:[#allocation8] sm:$0xff] %v156_v38 }
 0x25a   :  { %318 = shalt.err (!%p315_p6)
}
 0x25b   :  { %s319_s15 = scalar_lea.hbm %s412_s3, 128 }
 0x25c   :  { %p320_p7 = scmp.ne.s32.totalorder %s412_s3, %s319_s15  ;;  %p323_p8 = scmp.lt.u32.totalorder %s319_s15, %s412_s3 }
 0x25e   :  { %p325_p9 = pnand %p323_p8, %p320_p7 }
 0x260   :  { %328 = shalt.err (!%p325_p9)
}
 0x261   :  { %167 = dma.vmem_to_hbm [thread:$0]  %s165_s12, 128, %s412_s3, [#allocation5]  }
 0x262   :  { %333 = dma.done.wait [#allocation5], 128  }
 0x263   :  { %334 = vsyncadd [#allocation5], 4294967168 }
 0x264   :  { %171 = vsyncpa [#allocation4], 1 }
 0x265   :  { %172 = vsyncpa [#allocation7], 1 }
 0x266   :  { %173 = vsyncpa [#allocation5], 1 }

</bundles_post_ra>
